<compile_context>
chip_gen: v7x
topology: tpu7x:2x2x1
jax: 0.10.0
libtpu: 0.0.40
codegen_flags: <defaults>
</compile_context>

<pallas_src>
import functools
import warnings

import jax
import jax.numpy as jnp
from jax.experimental import pallas as pl
from jax.experimental.pallas import tpu as pltpu


# ----------------------------------------------------------------------------
# Kernel: per-column running min/max (the observer hot path)
# ----------------------------------------------------------------------------
def _col_minmax_kernel(x_ref, min_ref, max_ref, *, tile_n, n_rows, needs_mask):
    i = pl.program_id(1)                 # row-tile index (reduction axis, last)

    x = x_ref[...]                       # (tile_n, tile_c), input dtype

    if needs_mask:
        # Mask rows of the (padded) last tile: +inf for min, -inf for max.
        row = jax.lax.broadcasted_iota(jnp.int32, x.shape, 0) + i * tile_n
        valid = row < n_rows
        x_for_min = jnp.where(valid, x, jnp.array(jnp.inf, x.dtype))
        x_for_max = jnp.where(valid, x, jnp.array(-jnp.inf, x.dtype))
    else:
        x_for_min = x
        x_for_max = x

    # Fold (tile_n, tile_c) down to (8, tile_c) with elementwise (VPU) min/max
    # across groups of 8 sublanes -- no cross-sublane XLU reduce per step, and
    # the resident accumulator store stays full-sublane.
    rows, cols = x.shape
    if rows > 8 and rows % 8 == 0:
        g = rows // 8
        tmin = jnp.min(x_for_min.reshape(g, 8, cols), axis=0)
        tmax = jnp.max(x_for_max.reshape(g, 8, cols), axis=0)
    elif rows == 8:
        tmin = x_for_min
        tmax = x_for_max
    else:
        # Small / ragged single-tile batch: reduce to one row, broadcast to 8.
        tmin = jnp.broadcast_to(
            jnp.min(x_for_min, axis=0, keepdims=True), (8, cols))
        tmax = jnp.broadcast_to(
            jnp.max(x_for_max, axis=0, keepdims=True), (8, cols))

    tmin = tmin.astype(jnp.float32)
    tmax = tmax.astype(jnp.float32)

    @pl.when(i == 0)
    def _():
        # Initialize the resident accumulator from the first row tile.
        min_ref[...] = tmin
        max_ref[...] = tmax

    @pl.when(i > 0)
    def _():
        min_ref[...] = jnp.minimum(min_ref[...], tmin)
        max_ref[...] = jnp.maximum(max_ref[...], tmax)


def _choose_tiles(n, c, itemsize):
    """Pick (tile_n, tile_c): lane-dense channel tiles, ~4 MiB row tiles."""
    # Sublane packing multiple for the input dtype (8 f32, 16 bf16, 32 int8).
    sub = max(8, 32 // max(1, itemsize))

    # Channel tile: a multiple of 128 that divides C exactly, else full C.
    if c % 128 == 0:
        tile_c = 128
        for cand in (2048, 1024, 512, 256, 128):
            if c % cand == 0:
                tile_c = cand
                break
        tile_c = min(tile_c, c)
    else:
        tile_c = c

    # Row tile: ~4 MiB per x block (double-buffered ~8 MiB) -> fits the scoped
    # VMEM budget on v5e/v6e/v7x while amortizing per-grid-step overhead.
    target_bytes = 4 * 1024 * 1024
    target_rows = max(sub, target_bytes // max(1, tile_c * itemsize))
    target_rows = max(sub, (target_rows // sub) * sub)
    target_rows = min(target_rows, 4096)

    tile_n = n if n <= target_rows else target_rows  # full-dim block is legal
    return tile_n, tile_c


@functools.partial(jax.jit, static_argnames=("tile_n", "tile_c"))
def per_column_minmax(x, running_min, running_max, *, tile_n=None, tile_c=None):
    """Returns updated (min_vals, max_vals), each (C,), float32."""
    n, c = x.shape
    itemsize = jnp.dtype(x.dtype).itemsize
    auto_n, auto_c = _choose_tiles(n, c, itemsize)
    tile_n = auto_n if tile_n is None else tile_n
    tile_c = auto_c if tile_c is None else tile_c
    assert c % tile_c == 0, "tile_c must divide the channel count"

    nr = pl.cdiv(n, tile_n)
    nc = c // tile_c
    needs_mask = (n % tile_n) != 0

    kernel = functools.partial(
        _col_minmax_kernel, tile_n=tile_n, n_rows=n, needs_mask=needs_mask)

    out_min8, out_max8 = pl.pallas_call(
        kernel,
        out_shape=(jax.ShapeDtypeStruct((8, c), jnp.float32),
                   jax.ShapeDtypeStruct((8, c), jnp.float32)),
        grid_spec=pltpu.PrefetchScalarGridSpec(
            num_scalar_prefetch=0,
            grid=(nc, nr),                                 # channels, then rows
            in_specs=[
                pl.BlockSpec((tile_n, tile_c), lambda j, i: (i, j)),
            ],
            out_specs=[
                pl.BlockSpec((8, tile_c), lambda j, i: (0, j)),  # resident acc
                pl.BlockSpec((8, tile_c), lambda j, i: (0, j)),
            ],
        ),
        compiler_params=pltpu.CompilerParams(
            dimension_semantics=("parallel", "arbitrary"),
            vmem_limit_bytes=32 * 1024 * 1024),
    )(x)

    # Tiny (8, C) -> (C,) collapse + merge with the running state: plain jnp,
    # XLA fuses this for free (removes two DMA'd inputs / branches per step).
    new_min = jnp.minimum(running_min.astype(jnp.float32),
                          jnp.min(out_min8, axis=0))
    new_max = jnp.maximum(running_max.astype(jnp.float32),
                          jnp.max(out_max8, axis=0))
    return new_min, new_max


# ----------------------------------------------------------------------------
# Thin Python wrapper mirroring the nn.Module
# ----------------------------------------------------------------------------
class InputEqualizationObserver:
    """JAX/Pallas port of _InputEqualizationObserver (per-tensor qscheme)."""

    def __init__(self):
        # Running state is lazily sized on the first forward (like torch's
        # PerChannelMinMaxObserver); +/-inf merges as identity.
        self.min_vals = None
        self.max_vals = None
        self.equalization_scale = None

    def forward(self, x_orig):
        if x_orig.ndim != 2:
            raise ValueError(
                "InputEqualizationObserver only supports Linear layers")
        c = x_orig.shape[1]
        if self.min_vals is None:
            self.min_vals = jnp.full((c,), jnp.inf, jnp.float32)
            self.max_vals = jnp.full((c,), -jnp.inf, jnp.float32)
        self.min_vals, self.max_vals = per_column_minmax(
            x_orig, self.min_vals, self.max_vals)
        return x_orig  # observer forward is identity on the data

    __call__ = forward

    def get_input_minmax(self):
        return self.min_vals, self.max_vals

    def set_equalization_scale(self, equalization_scale):
        self.equalization_scale = equalization_scale

    def calculate_scaled_minmax(self):
        """Returns the scaled global min/max inputs (scalars)."""
        if self.equalization_scale is None or self.equalization_scale.size == 0:
            warnings.warn(
                "Must call calculate_equalization_scale before calling "
                "calculate_scaled_minmax. Returning default min and max input.")
            return jnp.zeros((1,), jnp.float32), jnp.zeros((1,), jnp.float32)
        # One (C,)-sized multiply + reduce: plain jnp -- a pallas_call here is
        # pure launch overhead and a lane-width-1 masked store.
        min_inputs, max_inputs = self.get_input_minmax()
        scale = self.equalization_scale.astype(jnp.float32)
        min_scaled = jnp.min(min_inputs * scale)
        max_scaled = jnp.max(max_inputs * scale)
        return min_scaled, max_scaled


if __name__ == "__main__":
    key = jax.random.PRNGKey(0)
    N, C = 8, 32   # Linear-layer activations: (batch, hidden)
    kx, ks, k2, k3 = jax.random.split(key, 4)
    x = jax.random.normal(kx, (N, C), dtype=jnp.float32)

    obs = InputEqualizationObserver()
    y = obs(x)                      # forward: updates running min/max, returns x
    y = jax.block_until_ready(y)

    min_vals, max_vals = obs.get_input_minmax()
    jax.block_until_ready((min_vals, max_vals))
    ref_min = jnp.min(x, axis=0)
    ref_max = jnp.max(x, axis=0)
    assert jnp.allclose(y, x)
    assert jnp.allclose(min_vals, ref_min)
    assert jnp.allclose(max_vals, ref_max)

    # second forward merges with the running state
    x2 = jax.random.normal(k2, (N, C), dtype=jnp.float32) * 2.0
    obs(x2)
    jax.block_until_ready(obs.min_vals)
    assert jnp.allclose(obs.min_vals, jnp.minimum(ref_min, jnp.min(x2, axis=0)))
    assert jnp.allclose(obs.max_vals, jnp.maximum(ref_max, jnp.max(x2, axis=0)))

    # exercise the channel-tiling + ragged-row masking paths directly
    x3 = jax.random.normal(k3, (20, 256), dtype=jnp.float32)
    rmin = jnp.full((256,), jnp.inf, jnp.float32)
    rmax = jnp.full((256,), -jnp.inf, jnp.float32)
    m3, M3 = per_column_minmax(x3, rmin, rmax, tile_n=16, tile_c=128)
    jax.block_until_ready((m3, M3))
    assert jnp.allclose(m3, jnp.min(x3, axis=0))
    assert jnp.allclose(M3, jnp.max(x3, axis=0))

    # scaled min/max path (plain jnp — tiny (C,) op)
    eq_scale = jax.random.uniform(ks, (C,), jnp.float32, 0.5, 1.5)
    obs.set_equalization_scale(eq_scale)
    smin, smax = obs.calculate_scaled_minmax()
    jax.block_until_ready((smin, smax))
    assert jnp.allclose(smin, jnp.min(obs.min_vals * eq_scale))
    assert jnp.allclose(smax, jnp.max(obs.max_vals * eq_scale))

    print("KERNEL_OK")
</pallas_src>

<mosaic_0001>
module attributes {stable_mosaic.version = 11 : i64} {
  func.func @_col_minmax_kernel(%arg0: i32, %arg1: i32, %arg2: memref<8x32xf32, #tpu.memory_space<vmem>>, %arg3: memref<8x32xf32, #tpu.memory_space<vmem>>, %arg4: memref<8x32xf32, #tpu.memory_space<vmem>>) attributes {dimension_semantics = [#tpu.dimension_semantics<parallel>, #tpu.dimension_semantics<arbitrary>], iteration_bounds = array<i64: 1, 1>, scalar_prefetch = 0 : i64, scratch_operands = 0 : i64, tpu.core_type = #tpu.core_type<tc>, window_params = [{transform_indices = @transform_0, window_bounds = array<i64: 8, 32>}, {transform_indices = @transform_1, window_bounds = array<i64: 8, 32>}, {transform_indices = @transform_2, window_bounds = array<i64: 8, 32>}]} {
    %c0 = arith.constant 0 : index
    %c0_0 = arith.constant 0 : index
    %0 = vector.load %arg2[%c0, %c0_0] : memref<8x32xf32, #tpu.memory_space<vmem>>, vector<8x32xf32>
    %c0_i32 = arith.constant 0 : i32
    %1 = arith.cmpi eq, %arg1, %c0_i32 : i32
    %2 = arith.extui %1 : i1 to i32
    %c0_i32_1 = arith.constant 0 : i32
    %3 = arith.cmpi ne, %2, %c0_i32_1 : i32
    scf.if %3 {
      %c0_4 = arith.constant 0 : index
      %c0_5 = arith.constant 0 : index
      %7 = vector.load %arg3[%c0_4, %c0_5] : memref<8x32xf32, #tpu.memory_space<vmem>>, vector<8x32xf32>
      tpu.vector_store %arg3[%c0_4, %c0_5], %0 {strides = array<i32>} : memref<8x32xf32, #tpu.memory_space<vmem>>, vector<8x32xf32>,
      %c0_6 = arith.constant 0 : index
      %c0_7 = arith.constant 0 : index
      %8 = vector.load %arg4[%c0_6, %c0_7] : memref<8x32xf32, #tpu.memory_space<vmem>>, vector<8x32xf32>
      tpu.vector_store %arg4[%c0_6, %c0_7], %0 {strides = array<i32>} : memref<8x32xf32, #tpu.memory_space<vmem>>, vector<8x32xf32>,
    } else {
    }
    %c0_i32_2 = arith.constant 0 : i32
    %4 = arith.cmpi sgt, %arg1, %c0_i32_2 : i32
    %5 = arith.extui %4 : i1 to i32
    %c0_i32_3 = arith.constant 0 : i32
    %6 = arith.cmpi ne, %5, %c0_i32_3 : i32
    scf.if %6 {
      %c0_4 = arith.constant 0 : index
      %c0_5 = arith.constant 0 : index
      %7 = vector.load %arg3[%c0_4, %c0_5] : memref<8x32xf32, #tpu.memory_space<vmem>>, vector<8x32xf32>
      %8 = arith.minimumf %7, %0 : vector<8x32xf32>
      %c0_6 = arith.constant 0 : index
      %c0_7 = arith.constant 0 : index
      %9 = vector.load %arg3[%c0_6, %c0_7] : memref<8x32xf32, #tpu.memory_space<vmem>>, vector<8x32xf32>
      tpu.vector_store %arg3[%c0_6, %c0_7], %8 {strides = array<i32>} : memref<8x32xf32, #tpu.memory_space<vmem>>, vector<8x32xf32>,
      %c0_8 = arith.constant 0 : index
      %c0_9 = arith.constant 0 : index
      %10 = vector.load %arg4[%c0_8, %c0_9] : memref<8x32xf32, #tpu.memory_space<vmem>>, vector<8x32xf32>
      %11 = arith.maximumf %10, %0 : vector<8x32xf32>
      %c0_10 = arith.constant 0 : index
      %c0_11 = arith.constant 0 : index
      %12 = vector.load %arg4[%c0_10, %c0_11] : memref<8x32xf32, #tpu.memory_space<vmem>>, vector<8x32xf32>
      tpu.vector_store %arg4[%c0_10, %c0_11], %11 {strides = array<i32>} : memref<8x32xf32, #tpu.memory_space<vmem>>, vector<8x32xf32>,
    } else {
    }
    return
  }
  func.func @transform_0(%arg0: i32, %arg1: i32) -> (i32, i32) {
    %c0_i32 = arith.constant 0 : i32
    return %arg1, %arg0 : i32, i32
  }
  func.func @transform_1(%arg0: i32, %arg1: i32) -> (i32, i32) {
    %c0_i32 = arith.constant 0 : i32
    %c0_i32_0 = arith.constant 0 : i32
    return %c0_i32, %arg0 : i32, i32
  }
  func.func @transform_2(%arg0: i32, %arg1: i32) -> (i32, i32) {
    %c0_i32 = arith.constant 0 : i32
    %c0_i32_0 = arith.constant 0 : i32
    return %c0_i32, %arg0 : i32, i32
  }
}

</mosaic_0001>

<bundles_post_ra>
// kernel: per_column_minmax.1
= control target key start
LH: loop header
LB: loop body
LE: loop exit
PB: predicated region body
PF: predicated region fallthrough
CT: control target
= control target key end

     0   :  { %8 = vsyncpa [#allocation3], 0  ;;  %s75_s9 = smov [#allocation2]   ;;  %s109_s0 = inlined_call_operand.hbm [shape: f32[8,32], index: 0, kind: input, shape index: {}]   ;;  %s110_s1 = inlined_call_operand.vmem [shape: f32[8,32], index: 1, kind: output, shape index: {0}]   ;;  %s111_s2 = inlined_call_operand.vmem [shape: f32[8,32], index: 2, kind: output, shape index: {1}]  }
   0x1   :  { %s15_s10 = sshll.u32 %s75_s9, 4  ;;  %s51_s13 = scalar_lea.hbm %s109_s0, 128  ;;  %s16_s10 = int_to_ptr.vmem [resolvable:$true] %s15_s10 }
   0x2   :  { %p52_p0 = scmp.ne.s32.totalorder %s109_s0, %s51_s13  ;;  %p55_p1 = scmp.lt.u32.totalorder %s51_s13, %s109_s0 }
   0x4   :  { %p57_p2 = pnand %p55_p1, %p52_p0 }
   0x6   :  { %60 = shalt.err (!%p57_p2)
}
   0x7   :  { %s61_s18 = scalar_lea.vmem %s16_s10, 128  ;;  %p66_p4 = scmp.lt.s32.totalorder %s16_s10, %s16_s10 }
   0x8   :  { %p62_p3 = scmp.ne.s32.totalorder %s16_s10, %s61_s18  ;;  %p67_p5 = scmp.lt.s32.totalorder %s61_s18, %s61_s18 }
   0xa   :  { %p68_p6 = por %p67_p5, %p66_p4 }
   0xc   :  { %p69_p7 = pnand %p68_p6, %p62_p3 }
   0xe   :  { %72 = shalt.err (!%p69_p7)
}
   0xf   :  { %18 = dma.hbm_to_vmem [thread:$0]  %s109_s0, 128, %s16_s10, [#allocation3]  }
  0x10   :  { %73 = dma.done.wait [#allocation3], 128  }
  0x11   :  { %74 = vsyncadd [#allocation3], 4294967168  ;;  %vm27_vm0 = vcmask 261120   ;;  %v22_v0 = vld [vmem:[#allocation2] sm:$0xff] }
  0x12   :  { %28 = vst.msk [vmem:[%s110_s1] sm:$0xff] %vm27_vm0, %v22_v0  ;;  %29 = vst.msk [vmem:[%s111_s2] sm:$0xff] %vm27_vm0, %v22_v0 }
  0x13   :  { %49 = vsyncpa [#allocation3], 1 }

</bundles_post_ra>
